<compile_context>
chip_gen: v7x
topology: tpu7x:2x2x1
jax: 0.10.0
libtpu: 0.0.40
codegen_flags: <defaults>
</compile_context>

<pallas_src>
import functools
import itertools

import jax
import jax.numpy as jnp
from jax.experimental import pallas as pl
from jax.experimental.pallas import tpu as pltpu


def hardswish(x):
    return x * jnp.clip(x + 3.0, 0.0, 6.0) * (1.0 / 6.0)


def attention_kernel(x_ref, wqkv_ref, bqkv_ref, ab_ref, wpT_ref, bp_ref, o_ref,
                     *, num_heads, key_dim, d, block_b, n_tok):
    """LeViT attention for a block of `block_b` batch elements.

    x_ref    : (Bt, N, C)       input tokens for this block
    wqkv_ref : (C, h_total)     fused qkv weight, pre-transposed, q pre-scaled,
                                columns ordered [q_h0..q_hH | k_h0..k_hH | v_h0..v_hH]
    bqkv_ref : (1, h_total)     matching fused bias (q part pre-scaled)
    ab_ref   : (H, N, N)        pre-gathered attention biases (== self.ab)
    wpT_ref  : (dh, C)          proj weight, pre-transposed (Wp.T)
    bp_ref   : (1, C)           proj bias
    o_ref    : (Bt, N, C)       output
    """
    C = x_ref.shape[-1]
    x = x_ref[...].reshape(block_b * n_tok, C)                       # (Bt*N, C)

    # One lane-dense fused qkv matmul (output last dim = h_total = 128).
    qkv = jnp.dot(x, wqkv_ref[...], preferred_element_type=jnp.float32) + bqkv_ref[...]
    qkv = qkv.reshape(block_b, n_tok, -1)                            # (Bt, N, h_total)

    hkd = num_heads * key_dim
    outs = []
    for h in range(num_heads):
        q = qkv[:, :, h * key_dim:(h + 1) * key_dim]                 # (Bt, N, kd), scaled
        k = qkv[:, :, hkd + h * key_dim: hkd + (h + 1) * key_dim]    # (Bt, N, kd)
        v = qkv[:, :, 2 * hkd + h * d: 2 * hkd + (h + 1) * d]        # (Bt, N, d)

        # q @ k^T without materializing a transpose (contract last dims).
        attn = jnp.einsum('bnk,bmk->bnm', q, k,
                          preferred_element_type=jnp.float32)        # (Bt, N, N)
        attn = attn + ab_ref[h]                                      # broadcast over Bt
        attn = attn - jnp.max(attn, axis=-1, keepdims=True)
        p = jnp.exp(attn)
        s = jnp.sum(p, axis=-1, keepdims=True)
        attn = p * pl.reciprocal(s, approx=False)                    # exact reciprocal

        outs.append(jnp.einsum('bnm,bmd->bnd', attn, v,
                               preferred_element_type=jnp.float32))  # (Bt, N, d)

    # Fused output projection: hardswish once on the concatenated heads,
    # single matmul against Wp.T, single bias add.
    out = hardswish(jnp.concatenate(outs, axis=-1))                  # (Bt, N, dh)
    out = out.reshape(block_b * n_tok, -1)                           # (Bt*N, dh)
    proj = jnp.dot(out, wpT_ref[...], preferred_element_type=jnp.float32) + bp_ref[...]
    o_ref[...] = proj.reshape(block_b, n_tok, C).astype(o_ref.dtype)


def levit_attention(x, wqkv_fused, bqkv_fused, ab, wpT, bp,
                    *, num_heads, key_dim, d, block_b):
    B, N, C = x.shape
    assert B % block_b == 0, (B, block_b)

    kernel = functools.partial(attention_kernel, num_heads=num_heads,
                               key_dim=key_dim, d=d, block_b=block_b, n_tok=N)

    # Batch-invariant params: full-shape blocks with constant index_map
    # (DMA'd once, no re-fetch across grid steps).
    full = lambda a: pl.BlockSpec(a.shape, lambda b: (0,) * a.ndim)

    return pl.pallas_call(
        kernel,
        out_shape=jax.ShapeDtypeStruct((B, N, C), x.dtype),
        grid_spec=pltpu.PrefetchScalarGridSpec(
            num_scalar_prefetch=0,
            grid=(B // block_b,),
            in_specs=[
                pl.BlockSpec((block_b, N, C), lambda b: (b, 0, 0)),   # x
                full(wqkv_fused), full(bqkv_fused),
                full(ab),
                full(wpT), full(bp),
            ],
            out_specs=pl.BlockSpec((block_b, N, C), lambda b: (b, 0, 0)),
        ),
        compiler_params=pltpu.CompilerParams(dimension_semantics=("parallel",)),
    )(x, wqkv_fused, bqkv_fused, ab, wpT, bp)


def prepare_params(Wqkv, bqkv, Wp, bp_vec, *, num_heads, key_dim, d, scale):
    """Pure parameter plumbing (matches the PyTorch fused Linear + split)."""
    h_total, dim = Wqkv.shape
    per_head = 2 * key_dim + d
    Wr = Wqkv.reshape(num_heads, per_head, dim)
    br = bqkv.reshape(num_heads, per_head)
    # Fold the (power-of-two) softmax scale into the q slab -> bit-exact.
    wq = Wr[:, :key_dim, :] * scale                       # (H, kd, C)
    wk = Wr[:, key_dim:2 * key_dim, :]                    # (H, kd, C)
    wv = Wr[:, 2 * key_dim:, :]                           # (H, d,  C)
    bq = br[:, :key_dim] * scale
    bk = br[:, key_dim:2 * key_dim]
    bv = br[:, 2 * key_dim:]

    w_rows = jnp.concatenate([wq.reshape(num_heads * key_dim, dim),
                              wk.reshape(num_heads * key_dim, dim),
                              wv.reshape(num_heads * d, dim)], axis=0)   # (h_total, C)
    wqkv_fused = w_rows.T                                                 # (C, h_total)
    bqkv_fused = jnp.concatenate([bq.reshape(-1), bk.reshape(-1),
                                  bv.reshape(-1)])[None, :]               # (1, h_total)
    wpT = Wp.T                                                            # (dh, C)
    bp = bp_vec[None, :]                                                  # (1, C)
    return wqkv_fused, bqkv_fused, wpT, bp


def reference(x, Wqkv, bqkv, ab, Wp, bp, *, num_heads, key_dim, d, scale):
    """Plain-JAX replica of the PyTorch forward for validation."""
    B, N, C = x.shape
    qkv = x @ Wqkv.T + bqkv                                   # (B, N, h)
    qkv = qkv.reshape(B, N, num_heads, 2 * key_dim + d)
    q = qkv[..., :key_dim].transpose(0, 2, 1, 3)              # (B, H, N, kd)
    k = qkv[..., key_dim:2 * key_dim].transpose(0, 2, 1, 3)   # (B, H, N, kd)
    v = qkv[..., 2 * key_dim:].transpose(0, 2, 1, 3)          # (B, H, N, d)
    attn = jnp.einsum('bhnd,bhmd->bhnm', q, k) * scale + ab[None]
    attn = jax.nn.softmax(attn, axis=-1)
    out = jnp.einsum('bhnm,bhmd->bhnd', attn, v)
    out = out.transpose(0, 2, 1, 3).reshape(B, N, num_heads * d)
    out = hardswish(out)
    return out @ Wp.T + bp


if __name__ == "__main__":
    # Small, module-consistent shapes.
    B = 8
    dim = 32            # C
    key_dim = 16
    num_heads = 2
    attn_ratio = 2
    resolution = 4
    N = resolution * resolution          # 16
    d = attn_ratio * key_dim             # 32
    dh = d * num_heads                   # 64
    nh_kd = key_dim * num_heads          # 32
    h_total = dh + 2 * nh_kd             # 128
    scale = key_dim ** (-0.5)
    block_b = 4                          # 2 grid steps -> both v7x TCs get work

    key = jax.random.PRNGKey(0)
    k1, k2, k3, k4, k5 = jax.random.split(key, 5)

    # attention_bias_idxs (same construction as PyTorch __init__).
    points = list(itertools.product(range(resolution), range(resolution)))
    attention_offsets = {}
    idxs = []
    for p1 in points:
        for p2 in points:
            offset = (abs(p1[0] - p2[0]), abs(p1[1] - p2[1]))
            if offset not in attention_offsets:
                attention_offsets[offset] = len(attention_offsets)
            idxs.append(attention_offsets[offset])
    idxs = jnp.array(idxs, dtype=jnp.int32).reshape(N, N)

    # Parameters (deterministic synthetic init; PyTorch Linear: y = x @ W.T + b).
    Wqkv = 0.02 * jax.random.normal(k1, (h_total, dim), jnp.float32)
    bqkv = 0.02 * jax.random.normal(k2, (h_total,), jnp.float32)
    Wp = 0.02 * jax.random.normal(k3, (dim, dh), jnp.float32)
    bp_vec = 0.02 * jax.random.normal(k4, (dim,), jnp.float32)
    attention_biases = 0.02 * jax.random.normal(
        k5, (num_heads, len(attention_offsets)), jnp.float32)
    ab = attention_biases[:, idxs]                       # (H, N, N) == self.ab

    wqkv_fused, bqkv_fused, wpT, bp = prepare_params(
        Wqkv, bqkv, Wp, bp_vec,
        num_heads=num_heads, key_dim=key_dim, d=d, scale=scale)

    # Input.
    x = jax.random.normal(jax.random.PRNGKey(42), (B, N, dim), jnp.float32)

    out = levit_attention(x, wqkv_fused, bqkv_fused, ab, wpT, bp,
                          num_heads=num_heads, key_dim=key_dim, d=d,
                          block_b=block_b)
    out = jax.block_until_ready(out)

    ref = reference(x, Wqkv, bqkv, ab, Wp, bp_vec,
                    num_heads=num_heads, key_dim=key_dim, d=d, scale=scale)
    ref = jax.block_until_ready(ref)

    assert out.shape == (B, N, dim), out.shape
    assert jnp.allclose(out, ref, rtol=1e-5, atol=1e-5), float(jnp.max(jnp.abs(out - ref)))

    print("KERNEL_OK")
</pallas_src>

<mosaic_0001>
module attributes {stable_mosaic.version = 11 : i64} {
  func.func @attention_kernel(%arg0: i32, %arg1: memref<4x16x32xf32, #tpu.memory_space<vmem>>, %arg2: memref<32x128xf32, #tpu.memory_space<vmem>>, %arg3: memref<1x128xf32, #tpu.memory_space<vmem>>, %arg4: memref<2x16x16xf32, #tpu.memory_space<vmem>>, %arg5: memref<64x32xf32, #tpu.memory_space<vmem>>, %arg6: memref<1x32xf32, #tpu.memory_space<vmem>>, %arg7: memref<4x16x32xf32, #tpu.memory_space<vmem>>) attributes {dimension_semantics = [#tpu.dimension_semantics<parallel>], iteration_bounds = array<i64: 2>, scalar_prefetch = 0 : i64, scratch_operands = 0 : i64, tpu.core_type = #tpu.core_type<tc>, window_params = [{transform_indices = @transform_0, window_bounds = array<i64: 4, 16, 32>}, {pipeline_mode = #tpu.pipeline_mode<synchronous>, transform_indices = @transform_1, window_bounds = array<i64: 32, 128>}, {pipeline_mode = #tpu.pipeline_mode<synchronous>, transform_indices = @transform_2, window_bounds = array<i64: 1, 128>}, {pipeline_mode = #tpu.pipeline_mode<synchronous>, transform_indices = @transform_3, window_bounds = array<i64: 2, 16, 16>}, {pipeline_mode = #tpu.pipeline_mode<synchronous>, transform_indices = @transform_4, window_bounds = array<i64: 64, 32>}, {pipeline_mode = #tpu.pipeline_mode<synchronous>, transform_indices = @transform_5, window_bounds = array<i64: 1, 32>}, {transform_indices = @transform_6, window_bounds = array<i64: 4, 16, 32>}]} {
    %c0 = arith.constant 0 : index
    %c0_0 = arith.constant 0 : index
    %c0_1 = arith.constant 0 : index
    %0 = vector.load %arg1[%c0, %c0_0, %c0_1] : memref<4x16x32xf32, #tpu.memory_space<vmem>>, vector<4x16x32xf32>
    %1 = vector.shape_cast %0 : vector<4x16x32xf32> to vector<64x32xf32>
    %c0_2 = arith.constant 0 : index
    %c0_3 = arith.constant 0 : index
    %2 = vector.load %arg2[%c0_2, %c0_3] : memref<32x128xf32, #tpu.memory_space<vmem>>, vector<32x128xf32>
    %cst = arith.constant dense<0.000000e+00> : vector<64x128xf32>
    %3 = tpu.matmul %1, %2, %cst {dimension_numbers = #tpu.dot_dimension_numbers<[1], [0], [0], [1], [0, 0, 1, 1], [], []>} : vector<64x32xf32>, vector<32x128xf32>, vector<64x128xf32> -> vector<64x128xf32>
    %c0_4 = arith.constant 0 : index
    %c0_5 = arith.constant 0 : index
    %4 = vector.load %arg3[%c0_4, %c0_5] : memref<1x128xf32, #tpu.memory_space<vmem>>, vector<1x128xf32>
    %5 = vector.broadcast %4 : vector<1x128xf32> to vector<64x128xf32>
    %6 = arith.addf %3, %5 : vector<64x128xf32>
    %7 = vector.shape_cast %6 : vector<64x128xf32> to vector<4x16x128xf32>
    %8 = vector.extract_strided_slice %7 {offsets = [0, 0, 0], sizes = [4, 16, 16], strides = [1, 1, 1]} : vector<4x16x128xf32> to vector<4x16x16xf32>
    %9 = vector.extract_strided_slice %7 {offsets = [0, 0, 32], sizes = [4, 16, 16], strides = [1, 1, 1]} : vector<4x16x128xf32> to vector<4x16x16xf32>
    %10 = vector.extract_strided_slice %7 {offsets = [0, 0, 64], sizes = [4, 16, 32], strides = [1, 1, 1]} : vector<4x16x128xf32> to vector<4x16x32xf32>
    "tpu.trace_start"() <{level = 10 : i32, message = "bnk,bmk->bnm"}> : () -> ()
    %cst_6 = arith.constant dense<0.000000e+00> : vector<4x16x16xf32>
    %11 = tpu.matmul %8, %9, %cst_6 {dimension_numbers = #tpu.dot_dimension_numbers<[2], [2], [1], [1], [0, 0, 0, 1, 1, 1], [0], [0]>} : vector<4x16x16xf32>, vector<4x16x16xf32>, vector<4x16x16xf32> -> vector<4x16x16xf32>
    "tpu.trace_stop"() : () -> ()
    %c0_7 = arith.constant 0 : index
    %c0_8 = arith.constant 0 : index
    %c0_9 = arith.constant 0 : index
    %12 = vector.load %arg4[%c0_7, %c0_8, %c0_9] : memref<2x16x16xf32, #tpu.memory_space<vmem>>, vector<1x16x16xf32>
    %13 = vector.shape_cast %12 : vector<1x16x16xf32> to vector<16x16xf32>
    %14 = vector.shape_cast %13 : vector<16x16xf32> to vector<1x16x16xf32>
    %15 = vector.broadcast %14 : vector<1x16x16xf32> to vector<4x16x16xf32>
    %16 = arith.addf %11, %15 : vector<4x16x16xf32>
    %cst_10 = arith.constant dense<0xFF800000> : vector<4x16xf32>
    %17 = vector.multi_reduction <maximumf>, %16, %cst_10 [2] : vector<4x16x16xf32> to vector<4x16xf32>
    %18 = vector.shape_cast %17 : vector<4x16xf32> to vector<4x16x1xf32>
    %19 = vector.broadcast %18 : vector<4x16x1xf32> to vector<4x16x16xf32>
    %20 = arith.subf %16, %19 : vector<4x16x16xf32>
    %21 = math.exp %20 : vector<4x16x16xf32>
    %cst_11 = arith.constant dense<0.000000e+00> : vector<4x16xf32>
    %22 = vector.multi_reduction <add>, %21, %cst_11 [2] : vector<4x16x16xf32> to vector<4x16xf32>
    %23 = vector.shape_cast %22 : vector<4x16xf32> to vector<4x16x1xf32>
    %24 = tpu.reciprocal %23 : vector<4x16x1xf32> -> vector<4x16x1xf32>
    %25 = vector.broadcast %24 : vector<4x16x1xf32> to vector<4x16x16xf32>
    %26 = arith.mulf %21, %25 : vector<4x16x16xf32>
    "tpu.trace_start"() <{level = 10 : i32, message = "bnm,bmd->bnd"}> : () -> ()
    %cst_12 = arith.constant dense<0.000000e+00> : vector<4x16x32xf32>
    %27 = tpu.matmul %26, %10, %cst_12 {dimension_numbers = #tpu.dot_dimension_numbers<[2], [1], [1], [2], [0, 0, 0, 1, 1, 2], [0], [0]>} : vector<4x16x16xf32>, vector<4x16x32xf32>, vector<4x16x32xf32> -> vector<4x16x32xf32>
    "tpu.trace_stop"() : () -> ()
    %28 = vector.extract_strided_slice %7 {offsets = [0, 0, 16], sizes = [4, 16, 16], strides = [1, 1, 1]} : vector<4x16x128xf32> to vector<4x16x16xf32>
    %29 = vector.extract_strided_slice %7 {offsets = [0, 0, 48], sizes = [4, 16, 16], strides = [1, 1, 1]} : vector<4x16x128xf32> to vector<4x16x16xf32>
    %30 = vector.extract_strided_slice %7 {offsets = [0, 0, 96], sizes = [4, 16, 32], strides = [1, 1, 1]} : vector<4x16x128xf32> to vector<4x16x32xf32>
    "tpu.trace_start"() <{level = 10 : i32, message = "bnk,bmk->bnm"}> : () -> ()
    %cst_13 = arith.constant dense<0.000000e+00> : vector<4x16x16xf32>
    %31 = tpu.matmul %28, %29, %cst_13 {dimension_numbers = #tpu.dot_dimension_numbers<[2], [2], [1], [1], [0, 0, 0, 1, 1, 1], [0], [0]>} : vector<4x16x16xf32>, vector<4x16x16xf32>, vector<4x16x16xf32> -> vector<4x16x16xf32>
    "tpu.trace_stop"() : () -> ()
    %c1 = arith.constant 1 : index
    %c0_14 = arith.constant 0 : index
    %c0_15 = arith.constant 0 : index
    %32 = vector.load %arg4[%c1, %c0_14, %c0_15] : memref<2x16x16xf32, #tpu.memory_space<vmem>>, vector<1x16x16xf32>
    %33 = vector.shape_cast %32 : vector<1x16x16xf32> to vector<16x16xf32>
    %34 = vector.shape_cast %33 : vector<16x16xf32> to vector<1x16x16xf32>
    %35 = vector.broadcast %34 : vector<1x16x16xf32> to vector<4x16x16xf32>
    %36 = arith.addf %31, %35 : vector<4x16x16xf32>
    %cst_16 = arith.constant dense<0xFF800000> : vector<4x16xf32>
    %37 = vector.multi_reduction <maximumf>, %36, %cst_16 [2] : vector<4x16x16xf32> to vector<4x16xf32>
    %38 = vector.shape_cast %37 : vector<4x16xf32> to vector<4x16x1xf32>
    %39 = vector.broadcast %38 : vector<4x16x1xf32> to vector<4x16x16xf32>
    %40 = arith.subf %36, %39 : vector<4x16x16xf32>
    %41 = math.exp %40 : vector<4x16x16xf32>
    %cst_17 = arith.constant dense<0.000000e+00> : vector<4x16xf32>
    %42 = vector.multi_reduction <add>, %41, %cst_17 [2] : vector<4x16x16xf32> to vector<4x16xf32>
    %43 = vector.shape_cast %42 : vector<4x16xf32> to vector<4x16x1xf32>
    %44 = tpu.reciprocal %43 : vector<4x16x1xf32> -> vector<4x16x1xf32>
    %45 = vector.broadcast %44 : vector<4x16x1xf32> to vector<4x16x16xf32>
    %46 = arith.mulf %41, %45 : vector<4x16x16xf32>
    "tpu.trace_start"() <{level = 10 : i32, message = "bnm,bmd->bnd"}> : () -> ()
    %cst_18 = arith.constant dense<0.000000e+00> : vector<4x16x32xf32>
    %47 = tpu.matmul %46, %30, %cst_18 {dimension_numbers = #tpu.dot_dimension_numbers<[2], [1], [1], [2], [0, 0, 0, 1, 1, 2], [0], [0]>} : vector<4x16x16xf32>, vector<4x16x32xf32>, vector<4x16x32xf32> -> vector<4x16x32xf32>
    "tpu.trace_stop"() : () -> ()
    %48 = tpu.concatenate %27, %47 in 2 : vector<4x16x32xf32>, vector<4x16x32xf32> -> vector<4x16x64xf32>
    %cst_19 = arith.constant 3.000000e+00 : f32
    %49 = vector.broadcast %cst_19 : f32 to vector<4x16x64xf32>
    %50 = arith.addf %48, %49 : vector<4x16x64xf32>
    %cst_20 = arith.constant 0.000000e+00 : f32
    %cst_21 = arith.constant 6.000000e+00 : f32
    %51 = vector.broadcast %cst_20 : f32 to vector<4x16x64xf32>
    %52 = arith.maximumf %51, %50 : vector<4x16x64xf32>
    %53 = vector.broadcast %cst_21 : f32 to vector<4x16x64xf32>
    %54 = arith.minimumf %53, %52 : vector<4x16x64xf32>
    %55 = arith.mulf %48, %54 : vector<4x16x64xf32>
    %cst_22 = arith.constant 0.166666672 : f32
    %56 = vector.broadcast %cst_22 : f32 to vector<4x16x64xf32>
    %57 = arith.mulf %55, %56 : vector<4x16x64xf32>
    %58 = vector.shape_cast %57 : vector<4x16x64xf32> to vector<64x64xf32>
    %c0_23 = arith.constant 0 : index
    %c0_24 = arith.constant 0 : index
    %59 = vector.load %arg5[%c0_23, %c0_24] : memref<64x32xf32, #tpu.memory_space<vmem>>, vector<64x32xf32>
    %cst_25 = arith.constant dense<0.000000e+00> : vector<64x32xf32>
    %60 = tpu.matmul %58, %59, %cst_25 {dimension_numbers = #tpu.dot_dimension_numbers<[1], [0], [0], [1], [0, 0, 1, 1], [], []>} : vector<64x64xf32>, vector<64x32xf32>, vector<64x32xf32> -> vector<64x32xf32>
    %c0_26 = arith.constant 0 : index
    %c0_27 = arith.constant 0 : index
    %61 = vector.load %arg6[%c0_26, %c0_27] : memref<1x32xf32, #tpu.memory_space<vmem>>, vector<1x32xf32>
    %62 = vector.broadcast %61 : vector<1x32xf32> to vector<64x32xf32>
    %63 = arith.addf %60, %62 : vector<64x32xf32>
    %64 = vector.shape_cast %63 : vector<64x32xf32> to vector<4x16x32xf32>
    %c0_28 = arith.constant 0 : index
    %c0_29 = arith.constant 0 : index
    %c0_30 = arith.constant 0 : index
    %65 = vector.load %arg7[%c0_28, %c0_29, %c0_30] : memref<4x16x32xf32, #tpu.memory_space<vmem>>, vector<4x16x32xf32>
    tpu.vector_store %arg7[%c0_28, %c0_29, %c0_30], %64 {strides = array<i32>} : memref<4x16x32xf32, #tpu.memory_space<vmem>>, vector<4x16x32xf32>,
    return
  }
  func.func @transform_0(%arg0: i32) -> (i32, i32, i32) {
    %c0_i32 = arith.constant 0 : i32
    %c0_i32_0 = arith.constant 0 : i32
    %c0_i32_1 = arith.constant 0 : i32
    return %arg0, %c0_i32, %c0_i32_0 : i32, i32, i32
  }
  func.func @transform_1(%arg0: i32) -> (i32, i32) {
    %c0_i32 = arith.constant 0 : i32
    %c0_i32_0 = arith.constant 0 : i32
    %c0_i32_1 = arith.constant 0 : i32
    return %c0_i32, %c0_i32_0 : i32, i32
  }
  func.func @transform_2(%arg0: i32) -> (i32, i32) {
    %c0_i32 = arith.constant 0 : i32
    %c0_i32_0 = arith.constant 0 : i32
    %c0_i32_1 = arith.constant 0 : i32
    return %c0_i32, %c0_i32_0 : i32, i32
  }
  func.func @transform_3(%arg0: i32) -> (i32, i32, i32) {
    %c0_i32 = arith.constant 0 : i32
    %c0_i32_0 = arith.constant 0 : i32
    %c0_i32_1 = arith.constant 0 : i32
    %c0_i32_2 = arith.constant 0 : i32
    return %c0_i32, %c0_i32_0, %c0_i32_1 : i32, i32, i32
  }
  func.func @transform_4(%arg0: i32) -> (i32, i32) {
    %c0_i32 = arith.constant 0 : i32
    %c0_i32_0 = arith.constant 0 : i32
    %c0_i32_1 = arith.constant 0 : i32
    return %c0_i32, %c0_i32_0 : i32, i32
  }
  func.func @transform_5(%arg0: i32) -> (i32, i32) {
    %c0_i32 = arith.constant 0 : i32
    %c0_i32_0 = arith.constant 0 : i32
    %c0_i32_1 = arith.constant 0 : i32
    return %c0_i32, %c0_i32_0 : i32, i32
  }
  func.func @transform_6(%arg0: i32) -> (i32, i32, i32) {
    %c0_i32 = arith.constant 0 : i32
    %c0_i32_0 = arith.constant 0 : i32
    %c0_i32_1 = arith.constant 0 : i32
    return %arg0, %c0_i32, %c0_i32_0 : i32, i32, i32
  }
}

</mosaic_0001>

<bundles_post_ra>
// kernel: tpu_custom_call.1
= control target key start
LH: loop header
LB: loop body
LE: loop exit
PB: predicated region body
PF: predicated region fallthrough
CT: control target
= control target key end

     0   :  { %11 = vsyncpa [#allocation3], 0  ;;  %s3654_s0 = inlined_call_operand.hbm [shape: f32[8,16,32], index: 0, kind: input, shape index: {}]   ;;  %s3655_s1 = inlined_call_operand.vmem [shape: f32[32,128], index: 1, kind: input, shape index: {}]   ;;  %s3656_s2 = inlined_call_operand.vmem [shape: f32[1,128], index: 2, kind: input, shape index: {}]   ;;  %s3657_s3 = inlined_call_operand.vmem [shape: f32[2,16,16], index: 3, kind: input, shape index: {}]   ;;  %s3658_s4 = inlined_call_operand.vmem [shape: f32[64,32], index: 4, kind: input, shape index: {}]   ;;  %s3659_s5 = inlined_call_operand.vmem [shape: f32[1,32], index: 5, kind: input, shape index: {}]   ;;  %s3660_s6 = inlined_call_operand.hbm [shape: f32[8,16,32], index: 6, kind: output, shape index: {}]  }
   0x1   :  { %13 = vsyncpa [#allocation3 + $0x1], 0 }
   0x2   :  { %14 = vsyncpa [#allocation4], 0 }
   0x3   :  { %16 = vsyncpa [#allocation4 + $0x1], 0  ;;  %s3128_s21 = smov 0   ;;  %s3130_s22 = smov 0  }
   0x4   :  { %s3132_s23 = smov 0   ;;  %s3134_s24 = smov 0  }
   0x5 LB: > { %s3149_s25 = sadd.s32 4294967295, %s3080_s24   ;;  %s2341_s26 = sadd.s32 4294967294, %s3080_s24   ;;  %s3080_s24 = sphi %s3134_s24, %s3675_s24   ;;  %s3076_s23 = sphi %s3132_s23, %s3674_s23   ;;  %s3072_s22 = sphi %s3130_s22, %s3673_s22   ;;  %s3068_s21 = sphi %s3128_s21, %s3672_s21  }
   0x6   : > { %s3153_s27 = sadd.s32 1, %s3080_s24   ;;  %s29_s28 = sadd.s32 1, %s3076_s23 }
   0x7   : > { %s26_s29 = ssub.s32 %s3080_s24, %s3153_s27  ;;  %p36_p0 = scmp.ne.s32.totalorder %s3076_s23, %s3072_s22 }
   0x8   : > { %p27_p1 = scmp.eq.s32.totalorder %s26_s29, 0  ;;  %p37_p2 = scmp.eq.s32.totalorder %s3080_s24, 0 }
   0x9   : > { %p42_p3 = scmp.ne.s32.totalorder %s3072_s22, %s3068_s21  ;;  %p43_p4 = scmp.eq.s32.totalorder %s3149_s25, 0 }
   0xa   : > { %s3165_s30 = scalar_select %p27_p1, %s3076_s23, %s29_s28  }
   0xb   : > { %p3167_p5 = por %p37_p2, %p36_p0  ;;  %p3171_p6 = por %p43_p4, %p42_p3 }
   0xc   : > { %p171_p7 = scmp.eq.s32.totalorder %s3149_s25, 1  ;;  %p177_p8 = scmp.eq.s32.totalorder %s2341_s26, 1 }
   0xd   : > { %p2797_p10 = scmp.lt.s32.totalorder %s3080_s24, 2  ;;  %s212_s11 = sand.u32 1, %s3076_s23  }
   0xe   : > { %p3178_p11 = por %p171_p7, %p36_p0  ;;  %p3182_p12 = por %p177_p8, %p42_p3 }
   0xf   : > { %s2426_s12 = sshll.u32 %s3080_s24, 10  ;;  %s2344_s13 = sshll.u32 %s212_s11, 6 }
  0x10   : > { %s3664_s9 = scalar_select %p3178_p11, 1, 0 }
  0x11   : > { %s3665_s10 = scalar_select %p3182_p12, 1, 0 }
  0x12   : > { %s3191_s16 = scalar_lea.hbm %s3654_s0, %s2426_s12  ;;  %s216_s17 = scalar_lea.vmem [#allocation2], %s2344_s13 }
  0x13   : > { %s224_s18 = sshll.u32 %s216_s17, 4  ;;  %p3195_p13 = pnand %p2797_p10, %p3167_p5  ;;  %s3199_s18 = int_to_ptr.vmem [resolvable:$true] %s224_s18 }
  0x14   : > { %s3201_s20 = scalar_lea.sflag [#allocation3], %s212_s11  ;;  %s2984_s26 = scalar_lea.hbm %s3191_s16, 1024 }
  0x15   : > { %p2985_p0 = scmp.ne.s32.totalorder %s3191_s16, %s2984_s26  ;;  %p2986_p1 = pneg %p3195_p13 }
  0x16   : > { %s2989_s7 = scalar_lea.hbm %s3654_s0, 2048  ;;  %p2990_p4 = scmp.lt.u32.totalorder %s3191_s16, %s3654_s0 }
  0x17   : > { %p2987_p2 = pnand %p2986_p1, %p2985_p0  ;;  %p2991_p5 = scmp.lt.u32.totalorder %s2989_s7, %s2984_s26 }
  0x18   : > { %p2993_p8 = scmp.lt.u32.totalorder %s2984_s26, %s3191_s16 }
  0x19   : > { %p2988_p3 = pneg %p2987_p2  ;;  %p2992_p7 = por %p2991_p5, %p2990_p4 }
  0x1b   : > { %p2994_p10 = por %p2993_p8, %p2992_p7 }
  0x1d   : > { %p2995_p9 = pnand %p2994_p10, %p2988_p3 }
  0x1f   : > { %2998 = shalt.err (!%p2995_p9)
}
  0x20   : > { %s2999_s11 = scalar_lea.vmem %s3199_s18, 1024  ;;  %s3082_s14 = smov [#allocation2]  }
  0x21   : > { %p3000_p0 = scmp.ne.s32.totalorder %s3199_s18, %s2999_s11  ;;  %s3004_s15 = sshll.u32 %s3082_s14, 4  ;;  %s3005_s15 = int_to_ptr.vmem [resolvable:$false] %s3004_s15 }
  0x22   : > { %s3006_s17 = scalar_lea.vmem %s3005_s15, 2048  ;;  %p3007_p11 = scmp.lt.s32.totalorder %s3199_s18, %s3005_s15 }
  0x23   : > { %p3002_p2 = pnand %p3000_p0, %p2986_p1  ;;  %p3008_p4 = scmp.lt.s32.totalorder %s3006_s17, %s2999_s11 }
  0x25   : > { %p3003_p12 = pneg %p3002_p2  ;;  %p3009_p5 = por %p3008_p4, %p3007_p11 }
  0x27   : > { %p3010_p7 = pnand %p3009_p5, %p3003_p12 }
  0x29   : > { %3013 = shalt.err (!%p3010_p7)
}
  0x2a   : > { %s3083_s26 = smov 128   ;;  %s3084_s28 = smov 8  }
  0x2b   : > { %2792 = dma.hbm_to_vmem [thread:$0]  (!%p3195_p13), %s3191_s16, 1024, %s3199_s18, %s3201_s20, %s3083_s26, %s3083_s26, %s3084_s28  }
  0x2c   : > { %p2348_p9 = scmp.ge.s32.totalorder %s3080_s24, 1  ;;  %p232_p1 = scmp.lt.s32.totalorder %s3080_s24, 3 }
  0x2e   : > { %p233_p3 = pnand %p2348_p9, %p232_p1 }
  0x2f   : > { %s3232_s29 = sand.u32 (!%p233_p3), 1, %s3072_s22  }
  0x30   : > { %236 = sbr.rel (%p233_p3) target bundleno = 2180 (0x884), region = 44  ;;  %s2349_s7 = sshll.u32 (!%p233_p3), %s3232_s29, 6 }
  0x31   : > { %s239_s12 = scalar_lea.sflag (!%p233_p3), [#allocation3], %s3232_s29  ;;  %s242_s13 = scalar_lea.vmem (!%p233_p3), [#allocation2], %s2349_s7 }
  0x37   : > { %3059 = dma.done.wait (%p3171_p6), %s239_s12, 1024  }
  0x38   : > { %3061 = vsyncadd (%p3171_p6), %s239_s12, 4294966272  ;;  %vm292_vm0 = vcmask 261120   ;;  %v281_v0 = vld [vmem:[%s3655_s1] sm:$0xff]  ;;  %v282_v1 = vld [vmem:[%s3655_s1 + $0x8] sm:$0xff]  ;;  %vm430_vm1 = vcmask 130048   ;;  %s3085_s28 = smov 96  }
  0x39   : > { %v283_v2 = vld [vmem:[%s3655_s1 + $0x10] sm:$0xff]  ;;  %v2681_v3 = vpack.c.bf16 %v282_v1, %v281_v0  ;;  %v284_v4 = vld [vmem:[%s3655_s1 + $0x18] sm:$0xff]  ;;  %v273_v5 = vld [vmem:[%s242_s13] sm:$0xff]  ;;  %s3086_s19 = smov 64   ;;  %s3087_s20 = smov 80   ;;  %vm2115_vm3 = vcmask 523264  }
  0x3a   : > { %v2685_v6 = vpack.c.bf16 %v284_v4, %v283_v2  ;;  %2529 = vmatprep.mubr.msk.f32.mxu1 %vm292_vm0, %v273_v5  ;;  %v274_v7 = vld [vmem:[%s242_s13 + $0x8] sm:$0xff]  ;;  %v275_v8 = vld [vmem:[%s242_s13 + $0x10] sm:$0xff]  ;;  %v276_v9 = vld [vmem:[%s242_s13 + $0x18] sm:$0xff]  ;;  %s3088_s11 = smov 112   ;;  %s3089_s26 = smov 32  }
  0x3b   : > { %2682 = vmatprep.subr.bf16.mxu1 %v2681_v3  ;;  %v277_v10 = vld [vmem:[%s242_s13 + $0x20] sm:$0xff]  ;;  %v278_v11 = vld [vmem:[%s242_s13 + $0x28] sm:$0xff]  ;;  %v279_v12 = vld [vmem:[%s242_s13 + $0x30] sm:$0xff]  ;;  %p3669_p11 = scmp.ne.s32.totalorder %s3664_s9, 0  ;;  %s3090_s8 = smov [#allocation5]  }
  0x3c   : > { %2684 = vmatpush3.bf16.msra.mxu1 %v2681_v3  ;;  %v280_v13 = vld [vmem:[%s242_s13 + $0x38] sm:$0xff]  ;;  %v2351_v14 = vld [vmem:[%s3656_s2] ss:$0 sm:$0xff]  ;;  %vm3307_vm2 = vmpackc.low %vm430_vm1, %vm430_vm1 }
  0x3d   : > { %2686 = vmatprep.subr.bf16.mxu1 %v2685_v6  ;;  %v423_v52 = vld [vmem:[%s3657_s3 + $0x8] sm:$0xff]  ;;  %v422_v53 = vld [vmem:[%s3657_s3] sm:$0xff]  ;;  %v2385_v38 = vld [vmem:[%s3657_s3 + $0x18] sm:$0xff] }
  0x40   : > { %2688 = vmatpush3.bf16.msra.mxu1 %v2685_v6 }
  0x43   : > { %2530 = vmatmul.mubr.msk.f32.vlgmr.msra.gmra.mrb[0].mxu1 %vm292_vm0, %v274_v7 }
  0x44   : > { %2532 = vmatprep.mubr.msk.f32.mxu1 %vm292_vm0, %v275_v8 }
  0x47   : > { %2533 = vmatmul.mubr.msk.f32.gmra.mrb[2].mxu1 %vm292_vm0, %v276_v9 }
  0x48   : > { %2535 = vmatprep.mubr.msk.f32.mxu1 %vm292_vm0, %v277_v10 }
  0x4b   : > { %2536 = vmatmul.mubr.msk.f32.gmra.mrb[4].mxu1 %vm292_vm0, %v278_v11 }
  0x4c   : > { %2538 = vmatprep.mubr.msk.f32.mxu1 %vm292_vm0, %v279_v12 }
  0x4f   : > { %2539 = vmatmul.mubr.msk.f32.gmra.mrb[6].mxu1 %vm292_vm0, %v280_v13 }
 0x116   : > { %v2531_v15 = vpop.f32.mrb[0].mxu1 }
 0x117   : > { %v3265_v16 = vadd.f32 %v2531_v15, %v2351_v14  ;;  %v383_v17 = vpop.f32.mrb[1].mxu1 }
 0x118   : > { %v3267_v18 = vadd.f32 %v2351_v14, %v383_v17 }
 0x11a   : > { %2545 = vmatprep.mubr.msk.f32.mxu1 %vm430_vm1, %v3267_v18  ;;  %v2534_v19 = vpop.f32.mrb[2].mxu1  ;;  %v3273_v20 = vpack.i.bf16 %v3265_v16, %v3267_v18 }
 0x11b   : > { %v3275_v21 = vadd.f32 %v2534_v19, %v2351_v14  ;;  %v393_v22 = vpop.f32.mrb[3].mxu1 }
 0x11c   : > { %2841 = vrot.lane.b32.xlu0 %v3273_v20, %s3085_s28  ;;  %v3278_v23 = vadd.f32 %v2351_v14, %v393_v22 }
 0x11e   : > { %v2537_v24 = vpop.f32.mrb[4].mxu1  ;;  %v3282_v25 = vpack.i.bf16 %v3275_v21, %v3278_v23 }
 0x11f   : > { %v3284_v26 = vadd.f32 %v2537_v24, %v2351_v14  ;;  %v403_v27 = vpop.f32.mrb[5].mxu1 }
 0x120   : > { %v3286_v28 = vadd.f32 %v2351_v14, %v403_v27  ;;  %2846 = vrot.lane.b32.xlu0 %v3282_v25, %s3085_s28 }
 0x122   : > { %v3291_v29 = vpack.i.bf16 %v3284_v26, %v3286_v28  ;;  %2559 = vmatprep.mubr.msk.f32.mxu0 %vm430_vm1, %v3286_v28  ;;  %v2540_v30 = vpop.f32.mrb[6].mxu1 }
 0x123   : > { %v3295_v31 = vadd.f32 %v2540_v30, %v2351_v14  ;;  %v413_v32 = vpop.f32.mrb[7].mxu1 }
 0x124   : > { %2851 = vrot.lane.b32.xlu1 %v3291_v29, %s3085_s28  ;;  %v3298_v33 = vadd.f32 %v2351_v14, %v413_v32 }
 0x126   : > { %v3302_v34 = vpack.i.bf16 %v3295_v31, %v3298_v33 }
 0x128   : > { %2856 = vrot.lane.b32.xlu1 %v3302_v34, %s3085_s28  ;;  %s3018_s28 = sshll.u32 %s3090_s8, 4  ;;  %s3019_s28 = int_to_ptr.vmem [resolvable:$false] %s3018_s28 }
 0x129   : > { %s3020_s12 = scalar_lea.vmem %s3019_s28, 2048 }
 0x18e   : > { %v2842_v35 = vpop.permute.xlu0 %2841 }
 0x18f   : > { %v2844_v36 = vunpack.i.h.bf16 %v2842_v35  ;;  %v2843_v37 = vunpack.i.l.bf16 %v2842_v35 }
 0x191   : > { %v2689_v39 = vpack.c.bf16 %v2844_v36, %v2843_v37 }
 0x192   : > { %v2847_v40 = vpop.permute.xlu0 %2846 }
 0x193   : > { %2691 = vmatprep.subr.msk.bf16.mxu1 %vm3307_vm2, %v2689_v39  ;;  %v2849_v41 = vunpack.i.h.bf16 %v2847_v40  ;;  %v2848_v42 = vunpack.i.l.bf16 %v2847_v40 }
 0x194   : > { %2694 = vmatpush3.bf16.xpose.msk.msra.mxu1 %vm3307_vm2, %v2689_v39 }
 0x195   : > { %v2695_v43 = vpack.c.bf16 %v2849_v41, %v2848_v42 }
 0x196   : > { %v2852_v44 = vpop.permute.xlu1 %2851 }
 0x197   : > { %v2854_v45 = vunpack.i.h.bf16 %v2852_v44  ;;  %v2853_v46 = vunpack.i.l.bf16 %v2852_v44  ;;  %2697 = vmatprep.subr.msk.bf16.mxu1 %vm3307_vm2, %v2695_v43 }
 0x199   : > { %v2701_v47 = vpack.c.bf16 %v2854_v45, %v2853_v46 }
 0x19a   : > { %v2857_v48 = vpop.permute.xlu1 %2856 }
 0x19b   : > { %2546 = vmatmul.mubr.msk.f32.vlgmr.msra.gmra.mrb[8].mxu1 %vm430_vm1, %v3265_v16  ;;  %2703 = vmatprep.subr.msk.bf16.mxu0 %vm3307_vm2, %v2701_v47  ;;  %v2859_v49 = vunpack.i.h.bf16 %v2857_v48  ;;  %v2858_v50 = vunpack.i.l.bf16 %v2857_v48 }
 0x19c   : > { %2700 = vmatpush3.bf16.xpose.msk.msra.mxu1 %vm3307_vm2, %v2695_v43  ;;  %2552 = vmatprep.mubr.msk.f32.mxu1 %vm430_vm1, %v3278_v23 }
 0x19d   : > { %2706 = vmatpush3.bf16.xpose.msk.msra.mxu0 %vm3307_vm2, %v2701_v47  ;;  %v2707_v51 = vpack.c.bf16 %v2859_v49, %v2858_v50 }
 0x19f   : > { %2709 = vmatprep.subr.msk.bf16.mxu1 %vm3307_vm2, %v2707_v51 }
 0x1a3   : > { %2553 = vmatmul.mubr.msk.f32.vlgmr.msra.gmra.mrb[10].mxu1 %vm430_vm1, %v3275_v21 }
 0x1a4   : > { %2560 = vmatmul.mubr.msk.f32.vlgmr.msra.gmra.mrb[0].mxu0 %vm430_vm1, %v3284_v26  ;;  %2712 = vmatpush3.bf16.xpose.msk.msra.mxu1 %vm3307_vm2, %v2707_v51 }
 0x1a5   : > { %2566 = vmatprep.mubr.msk.f32.mxu1 %vm430_vm1, %v3298_v33 }
 0x1ab   : > { %2567 = vmatmul.mubr.msk.f32.vlgmr.msra.gmra.mrb[12].mxu1 %vm430_vm1, %v3295_v31 }
 0x26e   : > { %v2547_v54 = vpop.f32.mrb[8].mxu1 }
 0x26f   : > { %v511_v55 = vadd.f32 %v2547_v54, %v423_v52  ;;  %v505_v56 = vpop.f32.mrb[9].mxu1 }
 0x270   : > { %v506_v57 = vadd.f32 %v505_v56, %v422_v53 }
 0x271   : > { %v784_v58 = vsel %vm430_vm1, %v511_v55, -inf }
 0x272   : > { %785 = vmax.xlane.f32.xlu1 %v784_v58  ;;  %v781_v59 = vsel %vm430_vm1, %v506_v57, -inf }
 0x273   : > { %782 = vmax.xlane.f32.xlu0 %v781_v59 }
 0x276   : > { %v2554_v60 = vpop.f32.mrb[10].mxu1 }
 0x277   : > { %v2561_v61 = vpop.f32.mrb[0].mxu0  ;;  %v594_v62 = vpop.f32.mrb[11].mxu1  ;;  %v600_v2 = vadd.f32 %v2554_v60, %v423_v52 }
 0x278   : > { %v595_v63 = vadd.f32 %v594_v62, %v422_v53  ;;  %v683_v0 = vpop.f32.mrb[1].mxu0  ;;  %v689_v5 = vadd.f32 %v2561_v61, %v423_v52 }
 0x279   : > { %v684_v1 = vadd.f32 %v683_v0, %v422_v53  ;;  %v790_v7 = vsel %vm430_vm1, %v600_v2, -inf }
 0x27a   : > { %v787_v3 = vsel %vm430_vm1, %v595_v63, -inf  ;;  %v796_v11 = vsel %vm430_vm1, %v689_v5, -inf }
 0x27b   : > { %v793_v4 = vsel %vm430_vm1, %v684_v1, -inf  ;;  %788 = vmax.xlane.f32.xlu0 %v787_v3 }
 0x27c   : > { %794 = vmax.xlane.f32.xlu1 %v793_v4 }
 0x27e   : > { %v2568_v6 = vpop.f32.mrb[12].mxu1 }
 0x27f   : > { %v772_v8 = vpop.f32.mrb[13].mxu1  ;;  %791 = vmax.xlane.f32.xlu0 %v790_v7  ;;  %v3352_v10 = vadd.f32 %v2568_v6, %v423_v52 }
 0x280   : > { %v3350_v9 = vadd.f32 %v772_v8, %v422_v53 }
 0x281   : > { %v802_v12 = vsel %vm430_vm1, %v3352_v10, -inf }
 0x282   : > { %v799_v13 = vsel %vm430_vm1, %v3350_v9, -inf }
 0x283   : > { %797 = vmax.xlane.f32.xlu0 %v796_v11 }
 0x287   : > { %803 = vmax.xlane.f32.xlu0 %v802_v12 }
 0x28d   : > { %2861 = vrot.lane.b32.xlu1 %v3273_v20, %s3086_s19 }
 0x291   : > { %2871 = vrot.lane.b32.xlu1 %v3291_v29, %s3086_s19 }
 0x295   : > { %2876 = vrot.lane.b32.xlu1 %v3302_v34, %s3086_s19 }
 0x299   : > { %2886 = vrot.lane.b32.xlu1 %v3282_v25, %s3087_s20 }
 0x29d   : > { %2866 = vrot.lane.b32.xlu0 %v3282_v25, %s3086_s19  ;;  %s270_s19 = scalar_lea.vmem [#allocation5], %s2349_s7  ;;  %s2428_s7 = sshll.u32 %s3149_s25, 10 }
 0x29e   : > { %s3606_s15 = scalar_lea.hbm %s3660_s6, %s2428_s7  ;;  %s2254_s25 = scalar_lea.sflag [#allocation4], %s3232_s29 }
 0x2a1   : > { %2881 = vrot.lane.b32.xlu0 %v3273_v20, %s3087_s20 }
 0x2a5   : > { %2891 = vrot.lane.b32.xlu0 %v3291_v29, %s3087_s20 }
 0x2bd   : > { %800 = vmax.xlane.f32.xlu1 %v799_v13 }
 0x2ce   : > { %1220 = vrot.lane.b32.xlu1 %v3267_v18, %s3088_s11 }
 0x2ff   : > { %v786_v14 = vpop.xlane.xlu1 %785 }
 0x300   : > { %v806_v15 = vsub.f32 %v511_v55, %v786_v14  ;;  %v783_v17 = vpop.xlane.xlu0 %782 }
 0x301   : > { %v805_v19 = vsub.f32 %v506_v57, %v783_v17 }
 0x302   : > { %v815_v22 = vmul.f32 1.442695, %v806_v15 }
 0x303   : > { %v813_v24 = vmul.f32 1.442695, %v805_v19 }
 0x304   : > { %2920 = vpow2.f32 %v815_v22 }
 0x305   : > { %2922 = vpow2.f32 %v813_v24 }
 0x308   : > { %v789_v27 = vpop.xlane.xlu0 %788 }
 0x309   : > { %v795_v30 = vpop.xlane.xlu1 %794  ;;  %v807_v32 = vsub.f32 %v595_v63, %v789_v27 }
 0x30a   : > { %v809_v35 = vsub.f32 %v684_v1, %v795_v30 }
 0x30b   : > { %v817_v36 = vmul.f32 1.442695, %v807_v32 }
 0x30c   : > { %v821_v37 = vmul.f32 1.442695, %v809_v35  ;;  %v792_v39 = vpop.xlane.xlu0 %791 }
 0x30d   : > { %2924 = vpow2.f32 %v817_v36  ;;  %v2862_v40 = vpop.permute.xlu1 %2861  ;;  %v808_v41 = vsub.f32 %v600_v2, %v792_v39 }
 0x30e   : > { %v3371_v42 = vpop.eup %2920  ;;  %v2864_v18 = vunpack.i.h.bf16 %v2862_v40  ;;  %v2863_v43 = vunpack.i.l.bf16 %v2862_v40  ;;  %2926 = vpow2.f32 %v821_v37 }
 0x30f   : > { %v3373_v44 = vpop.eup %2922  ;;  %v819_v45 = vmul.f32 1.442695, %v808_v41  ;;  %v832_v46 = vsel %vm430_vm1, %v3371_v42, 0.0 }
 0x310   : > { %v2713_v47 = vpack.c.bf16 %v2864_v18, %v2863_v43  ;;  %833 = vadd.xlane.f32.xlu0 %v832_v46  ;;  %v798_v48 = vpop.xlane.xlu0 %797  ;;  %v829_v49 = vsel %vm430_vm1, %v3373_v44, 0.0 }
 0x311   : > { %2928 = vpow2.f32 %v819_v45  ;;  %v2872_v50 = vpop.permute.xlu1 %2871  ;;  %v810_v51 = vsub.f32 %v689_v5, %v798_v48  ;;  %830 = vadd.xlane.f32.xlu1 %v829_v49 }
 0x312   : > { %v2874_v52 = vunpack.i.h.bf16 %v2872_v50  ;;  %v2873_v53 = vunpack.i.l.bf16 %v2872_v50  ;;  %2714 = vmatprep.subr.bf16.mxu0 %v2713_v47 }
 0x313   : > { %v823_v54 = vmul.f32 1.442695, %v810_v51  ;;  %2716 = vmatpush3.bf16.msra.mxu0 %v2713_v47 }
 0x314   : > { %v3379_v55 = vpack.c.bf16 %v2874_v52, %v2873_v53  ;;  %v804_v56 = vpop.xlane.xlu0 %803 }
 0x315   : > { %2930 = vpow2.f32 %v823_v54  ;;  %v812_v57 = vsub.f32 %v3352_v10, %v804_v56  ;;  %v2877_v59 = vpop.permute.xlu1 %2876 }
 0x316   : > { %2722 = vmatprep.subr.bf16.mxu0 %v3379_v55  ;;  %v2879_v2 = vunpack.i.h.bf16 %v2877_v59  ;;  %v2878_v3 = vunpack.i.l.bf16 %v2877_v59 }
 0x317   : > { %v3383_v58 = vpop.eup %2924  ;;  %v827_v60 = vmul.f32 1.442695, %v812_v57 }
 0x318   : > { %v2867_v61 = vpop.permute.xlu0 %2866  ;;  %v835_v62 = vsel %vm430_vm1, %v3383_v58, 0.0  ;;  %v3387_v63 = vpop.eup %2926  ;;  %v3395_v8 = vpack.c.bf16 %v2879_v2, %v2878_v3 }
 0x319   : > { %2932 = vpow2.f32 %v827_v60  ;;  %v2869_v0 = vunpack.i.h.bf16 %v2867_v61  ;;  %v2868_v1 = vunpack.i.l.bf16 %v2867_v61  ;;  %836 = vadd.xlane.f32.xlu1 %v835_v62  ;;  %v841_v6 = vsel %vm430_vm1, %v3387_v63, 0.0  ;;  %v2887_v14 = vpop.permute.xlu1 %2886 }
 0x31a   : > { %v2888_v45 = vunpack.i.l.bf16 %v2887_v14 }
 0x31b   : > { %v3389_v4 = vpop.eup %2928  ;;  %v2717_v5 = vpack.c.bf16 %v2869_v0, %v2868_v1 }
 0x31c   : > { %v838_v7 = vsel %vm430_vm1, %v3389_v4, 0.0 }
 0x31d   : > { %842 = vadd.xlane.f32.xlu1 %v841_v6  ;;  %839 = vadd.xlane.f32.xlu0 %v838_v7 }
 0x31e   : > { %2718 = vmatprep.subr.bf16.mxu1 %v2717_v5 }
 0x31f   : > { %v3397_v10 = vpop.eup %2930  ;;  %2720 = vmatpush3.bf16.msra.mxu1 %v2717_v5 }
 0x320   : > { %2726 = vmatprep.subr.bf16.mxu1 %v3395_v8  ;;  %v844_v11 = vsel %vm430_vm1, %v3397_v10, 0.0 }
 0x321   : > { %845 = vadd.xlane.f32.xlu0 %v844_v11 }
 0x323   : > { %v3402_v12 = vpop.eup %2932 }
 0x324   : > { %v850_v13 = vsel %vm430_vm1, %v3402_v12, 0.0 }
 0x325   : > { %851 = vadd.xlane.f32.xlu0 %v850_v13 }
 0x32e   : > { %2896 = vrot.lane.b32.xlu1 %v3302_v34, %s3087_s20  ;;  %s2268_s20 = sshll.u32 %s270_s19, 4  ;;  %s3608_s20 = int_to_ptr.vmem [resolvable:$true] %s2268_s20 }
 0x32f   : > { %s3014_s17 = scalar_lea.vmem %s3608_s20, 1024  ;;  %p3021_p8 = scmp.lt.s32.totalorder %s3608_s20, %s3019_s28 }
 0x330   : > { %p3015_p6 = scmp.ne.s32.totalorder %s3608_s20, %s3014_s17  ;;  %p3022_p10 = scmp.lt.s32.totalorder %s3020_s12, %s3014_s17 }
 0x332   : > { %p3016_p12 = pnand %p3015_p6, %p3669_p11  ;;  %p3023_p0 = por %p3022_p10, %p3021_p8 }
 0x334   : > { %p3017_p13 = pneg %p3016_p12 }
 0x336   : > { %p3024_p2 = pnand %p3023_p0, %p3017_p13 }
 0x33b   : > { %1222 = vrot.lane.b32.xlu0 %v3265_v16, %s3088_s11 }
 0x33f   : > { %1311 = vrot.lane.b32.xlu0 %v3278_v23, %s3088_s11  ;;  %v2882_v23 = vpop.permute.xlu0 %2881 }
 0x340   : > { %v2884_v35 = vunpack.i.h.bf16 %v2882_v23  ;;  %v2883_v36 = vunpack.i.l.bf16 %v2882_v23 }
 0x343   : > { %1402 = vrot.lane.b32.xlu0 %v3286_v28, %s3088_s11  ;;  %v2892_v28 = vpop.permute.xlu0 %2891 }
 0x344   : > { %v2894_v49 = vunpack.i.h.bf16 %v2892_v28  ;;  %v2893_v50 = vunpack.i.l.bf16 %v2892_v28 }
 0x347   : > { %1493 = vrot.lane.b32.xlu0 %v3298_v33, %s3088_s11 }
 0x34a   : > { %v801_v15 = vpop.xlane.xlu1 %800 }
 0x34b   : > { %v811_v17 = vsub.f32 %v3350_v9, %v801_v15 }
 0x34d   : > { %v825_v19 = vmul.f32 1.442695, %v811_v17 }
 0x34e   : > { %v1221_v33 = vpop.permute.xlu1 %1220 }
 0x34f   : > { %2934 = vpow2.f32 %v825_v19 }
 0x359   : > { %v3417_v22 = vpop.eup %2934 }
 0x35a   : > { %v847_v16 = vsel %vm430_vm1, %v3417_v22, 0.0 }
 0x35b   : > { %848 = vadd.xlane.f32.xlu1 %v847_v16 }
 0x36c   : > { %1313 = vrot.lane.b32.xlu1 %v3275_v21, %s3088_s11 }
 0x370   : > { %1404 = vrot.lane.b32.xlu1 %v3284_v26, %s3088_s11 }
 0x374   : > { %1495 = vrot.lane.b32.xlu1 %v3295_v31, %s3088_s11  ;;  %v2729_v31 = vpack.c.bf16 %v2884_v35, %v2883_v36 }
 0x39d   : > { %v834_v9 = vpop.xlane.xlu0 %833 }
 0x39e   : > { %2936 = vrcp.f32 %v834_v9  ;;  %v831_v24 = vpop.xlane.xlu1 %830 }
 0x39f   : > { %2938 = vrcp.f32 %v831_v24 }
 0x3a6   : > { %v837_v27 = vpop.xlane.xlu1 %836 }
 0x3a7   : > { %2940 = vrcp.f32 %v837_v27 }
 0x3a8   : > { %v2937_v30 = vpop.eup %2936 }
 0x3a9   : > { %v2939_v32 = vpop.eup %2938  ;;  %v862_v39 = vmul.f32 %v2937_v30, %v3371_v42 }
 0x3aa   : > { %v843_v21 = vpop.xlane.xlu1 %842  ;;  %v840_v37 = vpop.xlane.xlu0 %839  ;;  %v861_v26 = vmul.f32 %v2939_v32, %v3373_v44  ;;  %v2889_v44 = vunpack.i.h.bf16 %v2887_v14  ;;  %v2384_v14 = vld [vmem:[%s3657_s3 + $0x10] sm:$0xff] }
 0x3ab   : > { %2942 = vrcp.f32 %v843_v21 }
 0x3ac   : > { %2944 = vrcp.f32 %v840_v37  ;;  %2573 = vmatprep.mubr.msk.f32.mxu0 %vm430_vm1, %v861_v26  ;;  %v2735_v53 = vpack.c.bf16 %v2889_v44, %v2888_v45 }
 0x3ad   : > { %2574 = vmatmul.mubr.msk.f32.vlgmr.msra.gmra.mrb[2].mxu0 %vm430_vm1, %v862_v39 }
 0x3ae   : > { %2724 = vmatpush3.bf16.msra.mxu0 %v3379_v55  ;;  %v846_v40 = vpop.xlane.xlu0 %845  ;;  %v2741_v55 = vpack.c.bf16 %v2894_v49, %v2893_v50 }
 0x3af   : > { %2946 = vrcp.f32 %v846_v40  ;;  %2731 = vmatprep.subr.msk.bf16.mxu0 %vm3307_vm2, %v2729_v31 }
 0x3b1   : > { %v2941_v41 = vpop.eup %2940 }
 0x3b2   : > { %v852_v18 = vpop.xlane.xlu0 %851  ;;  %v863_v43 = vmul.f32 %v2941_v41, %v3383_v58  ;;  %v2897_v58 = vpop.permute.xlu1 %2896 }
 0x3b3   : > { %2948 = vrcp.f32 %v852_v18  ;;  %v2899_v0 = vunpack.i.h.bf16 %v2897_v58  ;;  %v2898_v1 = vunpack.i.l.bf16 %v2897_v58 }
 0x3b4   : > { %2580 = vmatprep.mubr.msk.f32.mxu1 %vm430_vm1, %v863_v43 }
 0x3b5   : > { %v2943_v42 = vpop.eup %2942 }
 0x3b6   : > { %v2945_v46 = vpop.eup %2944  ;;  %v865_v47 = vmul.f32 %v2943_v42, %v3387_v63  ;;  %v1223_v51 = vpop.permute.xlu0 %1222 }
 0x3b7   : > { %v864_v48 = vmul.f32 %v2945_v46, %v3389_v4  ;;  %v2747_v4 = vpack.c.bf16 %v2899_v0, %v2898_v1 }
 0x3b8   : > { %2587 = vmatprep.mubr.msk.f32.mxu0 %vm430_vm1, %v865_v47 }
 0x3b9   : > { %v2947_v52 = vpop.eup %2946  ;;  %2581 = vmatmul.mubr.msk.f32.vlgmr.msra.gmra.mrb[14].mxu1 %vm430_vm1, %v864_v48 }
 0x3ba   : > { %v866_v54 = vmul.f32 %v2947_v52, %v3397_v10  ;;  %2728 = vmatpush3.bf16.msra.mxu1 %v3395_v8  ;;  %v1312_v56 = vpop.permute.xlu0 %1311 }
 0x3bb   : > { %2737 = vmatprep.subr.msk.bf16.mxu1 %vm3307_vm2, %v2735_v53 }
 0x3bc   : > { %2588 = vmatmul.mubr.msk.f32.vlgmr.msra.gmra.mrb[4].mxu0 %vm430_vm1, %v866_v54 }
 0x3bd   : > { %2734 = vmatpush3.bf16.xpose.msk.msra.mxu0 %vm3307_vm2, %v2729_v31  ;;  %2601 = vmatprep.mubr.msk.f32.mxu0 %vm430_vm1, %v1221_v33  ;;  %v2949_v62 = vpop.eup %2948 }
 0x3be   : > { %2743 = vmatprep.subr.msk.bf16.mxu0 %vm3307_vm2, %v2741_v55  ;;  %v1403_v57 = vpop.permute.xlu0 %1402  ;;  %v868_v3 = vmul.f32 %v2949_v62, %v3402_v12 }
 0x3c2   : > { %v1494_v5 = vpop.permute.xlu0 %1493 }
 0x3c4   : > { %2602 = vmatmul.mubr.msk.f32.vlgmr.msra.gmra.mrb[6].mxu0 %vm430_vm1, %v1223_v51 }
 0x3c5   : > { %2746 = vmatpush3.bf16.xpose.msk.msra.mxu0 %vm3307_vm2, %v2741_v55  ;;  %2615 = vmatprep.mubr.msk.f32.mxu0 %vm430_vm1, %v1403_v57 }
 0x3e8   : > { %v849_v59 = vpop.xlane.xlu1 %848 }
 0x3e9   : > { %2950 = vrcp.f32 %v849_v59 }
 0x3ec   : > { %v1314_v60 = vpop.permute.xlu1 %1313 }
 0x3f0   : > { %v1405_v61 = vpop.permute.xlu1 %1404 }
 0x3f1   : > { %2616 = vmatmul.mubr.msk.f32.vlgmr.msra.gmra.mrb[8].mxu0 %vm430_vm1, %v1405_v61 }
 0x3f3   : > { %v2951_v63 = vpop.eup %2950 }
 0x3f4   : > { %v867_v2 = vmul.f32 %v2951_v63, %v3417_v22  ;;  %v1496_v6 = vpop.permute.xlu1 %1495 }
 0x3f6   : > { %2594 = vmatprep.mubr.msk.f32.mxu1 %vm430_vm1, %v867_v2 }
 0x3f7   : > { %2595 = vmatmul.mubr.msk.f32.vlgmr.msra.gmra.mrb[16].mxu1 %vm430_vm1, %v868_v3 }
 0x3f8   : > { %2740 = vmatpush3.bf16.xpose.msk.msra.mxu1 %vm3307_vm2, %v2735_v53  ;;  %2608 = vmatprep.mubr.msk.f32.mxu1 %vm430_vm1, %v1312_v56 }
 0x3f9   : > { %2749 = vmatprep.subr.msk.bf16.mxu1 %vm3307_vm2, %v2747_v4 }
 0x3ff   : > { %2609 = vmatmul.mubr.msk.f32.vlgmr.msra.gmra.mrb[18].mxu1 %vm430_vm1, %v1314_v60 }
 0x400   : > { %2752 = vmatpush3.bf16.xpose.msk.msra.mxu1 %vm3307_vm2, %v2747_v4  ;;  %2622 = vmatprep.mubr.msk.f32.mxu1 %vm430_vm1, %v1494_v5 }
 0x407   : > { %2623 = vmatmul.mubr.msk.f32.vlgmr.msra.gmra.mrb[20].mxu1 %vm430_vm1, %v1496_v6 }
 0x480   : > { %v3469_v7 = vpop.f32.mrb[2].mxu0 }
 0x481   : > { %v3471_v8 = vpop.f32.mrb[3].mxu0 }
 0x48c   : > { %v3473_v10 = vpop.f32.mrb[14].mxu1 }
 0x48d   : > { %v3475_v11 = vpop.f32.mrb[15].mxu1 }
 0x48f   : > { %v3477_v12 = vpop.f32.mrb[4].mxu0 }
 0x490   : > { %v3479_v13 = vpop.f32.mrb[5].mxu0 }
 0x497   : > { %v2603_v15 = vpop.f32.mrb[6].mxu0 }
 0x498   : > { %v1308_v17 = vadd.f32 %v2603_v15, %v2385_v38  ;;  %v1302_v19 = vpop.f32.mrb[7].mxu0 }
 0x499   : > { %v1303_v22 = vadd.f32 %v2384_v14, %v1302_v19 }
 0x49a   : > { %v1587_v16 = vsel %vm430_vm1, %v1308_v17, -inf }
 0x49b   : > { %1588 = vmax.xlane.f32.xlu1 %v1587_v16  ;;  %v1584_v23 = vsel %vm430_vm1, %v1303_v22, -inf }
 0x49c   : > { %1585 = vmax.xlane.f32.xlu0 %v1584_v23 }
 0x4c4   : > { %v2617_v28 = vpop.f32.mrb[8].mxu0 }
 0x4c5   : > { %v1484_v33 = vpop.f32.mrb[9].mxu0  ;;  %v1490_v26 = vadd.f32 %v2617_v28, %v2385_v38 }
 0x4c6   : > { %v1485_v9 = vadd.f32 %v2384_v14, %v1484_v33 }
 0x4c7   : > { %v1599_v42 = vsel %vm430_vm1, %v1490_v26, -inf }
 0x4c8   : > { %v1596_v24 = vsel %vm430_vm1, %v1485_v9, -inf }
 0x4c9   : > { %1597 = vmax.xlane.f32.xlu1 %v1596_v24 }
 0x4ca   : > { %v3490_v27 = vpop.f32.mrb[16].mxu1 }
 0x4cb   : > { %v3492_v30 = vpop.f32.mrb[17].mxu1 }
 0x4d2   : > { %v2610_v32 = vpop.f32.mrb[18].mxu1 }
 0x4d3   : > { %v1393_v35 = vpop.f32.mrb[19].mxu1  ;;  %v1399_v21 = vadd.f32 %v2610_v32, %v2385_v38 }
 0x4d4   : > { %v1394_v36 = vadd.f32 %v2384_v14, %v1393_v35 }
 0x4d5   : > { %v1593_v31 = vsel %vm430_vm1, %v1399_v21, -inf }
 0x4d6   : > { %v1590_v37 = vsel %vm430_vm1, %v1394_v36, -inf }
 0x4d7   : > { %1591 = vmax.xlane.f32.xlu0 %v1590_v37 }
 0x4da   : > { %v2624_v39 = vpop.f32.mrb[20].mxu1 }
 0x4db   : > { %v1575_v40 = vpop.f32.mrb[21].mxu1  ;;  %1594 = vmax.xlane.f32.xlu0 %v1593_v31  ;;  %v1581_v18 = vadd.f32 %v2624_v39, %v2385_v38 }
 0x4dc   : > { %v3496_v41 = vadd.f32 %v2384_v14, %v1575_v40 }
 0x4dd   : > { %v1605_v44 = vsel %vm430_vm1, %v1581_v18, -inf }
 0x4de   : > { %v1602_v43 = vsel %vm430_vm1, %v3496_v41, -inf }
 0x4df   : > { %1603 = vmax.xlane.f32.xlu1 %v1602_v43  ;;  %1600 = vmax.xlane.f32.xlu0 %v1599_v42 }
 0x4e3   : > { %1606 = vmax.xlane.f32.xlu0 %v1605_v44 }
 0x4f0   : > { %2901 = vrot.lane.b32.xlu1 %v3273_v20, %s3089_s26 }
 0x528   : > { %v1589_v45 = vpop.xlane.xlu1 %1588 }
 0x529   : > { %v1609_v46 = vsub.f32 %v1308_v17, %v1589_v45  ;;  %v1586_v47 = vpop.xlane.xlu0 %1585 }
 0x52a   : > { %v1608_v48 = vsub.f32 %v1303_v22, %v1586_v47 }
 0x52b   : > { %v1618_v49 = vmul.f32 1.442695, %v1609_v46 }
 0x52c   : > { %v1616_v50 = vmul.f32 1.442695, %v1608_v48 }
 0x52d   : > { %2952 = vpow2.f32 %v1618_v49 }
 0x52e   : > { %2954 = vpow2.f32 %v1616_v50 }
 0x537   : > { %v3504_v51 = vpop.eup %2952 }
 0x538   : > { %v2955_v52 = vpop.eup %2954  ;;  %v1635_v53 = vsel %vm430_vm1, %v3504_v51, 0.0 }
 0x539   : > { %1636 = vadd.xlane.f32.xlu0 %v1635_v53  ;;  %v1632_v54 = vsel %vm430_vm1, %v2955_v52, 0.0 }
 0x53a   : > { %1633 = vadd.xlane.f32.xlu1 %v1632_v54 }
 0x556   : > { %v1598_v55 = vpop.xlane.xlu1 %1597 }
 0x557   : > { %v1612_v20 = vsub.f32 %v1485_v9, %v1598_v55 }
 0x559   : > { %v1624_v58 = vmul.f32 1.442695, %v1612_v20 }
 0x564   : > { %v1592_v56 = vpop.xlane.xlu0 %1591 }
 0x565   : > { %v1610_v57 = vsub.f32 %v1394_v36, %v1592_v56 }
 0x567   : > { %v1620_v59 = vmul.f32 1.442695, %v1610_v57 }
 0x568   : > { %v1595_v60 = vpop.xlane.xlu0 %1594 }
 0x569   : > { %2956 = vpow2.f32 %v1620_v59  ;;  %v1611_v61 = vsub.f32 %v1399_v21, %v1595_v60 }
 0x56a   : > { %2958 = vpow2.f32 %v1624_v58 }
 0x56b   : > { %v1622_v62 = vmul.f32 1.442695, %v1611_v61 }
 0x56c   : > { %v1604_v63 = vpop.xlane.xlu1 %1603  ;;  %v1601_v0 = vpop.xlane.xlu0 %1600 }
 0x56d   : > { %2960 = vpow2.f32 %v1622_v62  ;;  %v1613_v1 = vsub.f32 %v1490_v26, %v1601_v0  ;;  %v1614_v35 = vsub.f32 %v3496_v41, %v1604_v63 }
 0x56f   : > { %v1626_v2 = vmul.f32 1.442695, %v1613_v1  ;;  %v1628_v36 = vmul.f32 1.442695, %v1614_v35 }
 0x570   : > { %v2902_v3 = vpop.permute.xlu1 %2901  ;;  %v1607_v4 = vpop.xlane.xlu0 %1606 }
 0x571   : > { %v2904_v5 = vunpack.i.h.bf16 %v2902_v3  ;;  %v2903_v6 = vunpack.i.l.bf16 %v2902_v3  ;;  %v1615_v38 = vsub.f32 %v1581_v18, %v1607_v4  ;;  %2962 = vpow2.f32 %v1626_v2  ;;  %v2100_v4 = vld [vmem:[%s3658_s4] sm:$0xff] }
 0x573   : > { %v2957_v14 = vpop.eup %2956  ;;  %v2753_v15 = vpack.c.bf16 %v2904_v5, %v2903_v6  ;;  %v1630_v17 = vmul.f32 1.442695, %v1615_v38  ;;  %v2101_v5 = vld [vmem:[%s3658_s4 + $0x8] sm:$0xff]  ;;  %v2102_v38 = vld [vmem:[%s3658_s4 + $0x10] sm:$0xff] }
 0x574   : > { %v1638_v19 = vsel %vm430_vm1, %v2957_v14, 0.0  ;;  %v2959_v22 = vpop.eup %2958  ;;  %v2769_v6 = vpack.c.bf16 %v2101_v5, %v2100_v4 }
 0x575   : > { %2964 = vpow2.f32 %v1630_v17  ;;  %2754 = vmatprep.subr.bf16.mxu0 %v2753_v15  ;;  %1639 = vadd.xlane.f32.xlu1 %v1638_v19  ;;  %v1644_v23 = vsel %vm430_vm1, %v2959_v22, 0.0  ;;  %v2104_v17 = vld [vmem:[%s3658_s4 + $0x20] sm:$0xff]  ;;  %v2105_v19 = vld [vmem:[%s3658_s4 + $0x28] sm:$0xff] }
 0x576   : > { %2756 = vmatpush3.bf16.msra.mxu0 %v2753_v15  ;;  %2966 = vpow2.f32 %v1628_v36 }
 0x577   : > { %v2961_v16 = vpop.eup %2960 }
 0x578   : > { %v1641_v28 = vsel %vm430_vm1, %v2961_v16, 0.0 }
 0x579   : > { %1645 = vadd.xlane.f32.xlu1 %v1644_v23  ;;  %1642 = vadd.xlane.f32.xlu0 %v1641_v28  ;;  %v2107_v23 = vld [vmem:[%s3658_s4 + $0x38] sm:$0xff] }
 0x57b   : > { %v2963_v33 = vpop.eup %2962 }
 0x57c   : > { %v1647_v9 = vsel %vm430_vm1, %v2963_v33, 0.0 }
 0x57d   : > { %1648 = vadd.xlane.f32.xlu0 %v1647_v9 }
 0x57f   : > { %v3513_v24 = vpop.eup %2964 }
 0x580   : > { %v1653_v32 = vsel %vm430_vm1, %v3513_v24, 0.0  ;;  %v2967_v21 = vpop.eup %2966 }
 0x581   : > { %1654 = vadd.xlane.f32.xlu0 %v1653_v32  ;;  %v1650_v37 = vsel %vm430_vm1, %v2967_v21, 0.0 }
 0x58a   : > { %2911 = vrot.lane.b32.xlu1 %v3291_v29, %s3089_s26 }
 0x597   : > { %2906 = vrot.lane.b32.xlu0 %v3282_v25, %s3089_s26 }
 0x5ae   : > { %1651 = vadd.xlane.f32.xlu1 %v1650_v37 }
 0x5bf   : > { %2916 = vrot.lane.b32.xlu1 %v3302_v34, %s3089_s26 }
 0x5c6   : > { %v1637_v26 = vpop.xlane.xlu0 %1636 }
 0x5c7   : > { %2968 = vrcp.f32 %v1637_v26  ;;  %v1634_v39 = vpop.xlane.xlu1 %1633 }
 0x5c8   : > { %2970 = vrcp.f32 %v1634_v39 }
 0x5d1   : > { %v2969_v31 = vpop.eup %2968 }
 0x5d2   : > { %v2971_v29 = vpop.eup %2970  ;;  %v1665_v41 = vmul.f32 %v2969_v31, %v3504_v51 }
 0x5d3   : > { %v1664_v40 = vmul.f32 %v2971_v29, %v2955_v52 }
 0x5d5   : > { %2629 = vmatprep.mubr.msk.f32.mxu0 %vm430_vm1, %v1664_v40 }
 0x5d6   : > { %2630 = vmatmul.mubr.msk.f32.vlgmr.msra.gmra.mrb[10].mxu0 %vm430_vm1, %v1665_v41 }
 0x602   : > { %v1640_v25 = vpop.xlane.xlu1 %1639 }
 0x603   : > { %2972 = vrcp.f32 %v1640_v25 }
 0x606   : > { %v1646_v18 = vpop.xlane.xlu1 %1645  ;;  %v1643_v43 = vpop.xlane.xlu0 %1642 }
 0x607   : > { %2974 = vrcp.f32 %v1646_v18 }
 0x60a   : > { %v2912_v42 = vpop.permute.xlu1 %2911  ;;  %v1649_v45 = vpop.xlane.xlu0 %1648 }
 0x60b   : > { %v2914_v34 = vunpack.i.h.bf16 %v2912_v42  ;;  %v2913_v44 = vunpack.i.l.bf16 %v2912_v42  ;;  %2976 = vrcp.f32 %v1649_v45 }
 0x60c   : > { %2978 = vrcp.f32 %v1643_v43 }
 0x60d   : > { %v2973_v46 = vpop.eup %2972  ;;  %v2761_v47 = vpack.c.bf16 %v2914_v34, %v2913_v44 }
 0x60e   : > { %v1666_v48 = vmul.f32 %v2973_v46, %v2957_v14  ;;  %v1655_v49 = vpop.xlane.xlu0 %1654  ;;  %v2103_v14 = vld [vmem:[%s3658_s4 + $0x18] sm:$0xff] }
 0x60f   : > { %2762 = vmatprep.subr.bf16.mxu0 %v2761_v47  ;;  %2980 = vrcp.f32 %v1655_v49  ;;  %v2773_v15 = vpack.c.bf16 %v2103_v14, %v2102_v38 }
 0x610   : > { %2636 = vmatprep.mubr.msk.f32.mxu1 %vm430_vm1, %v1666_v48  ;;  %2764 = vmatpush3.bf16.msra.mxu0 %v2761_v47 }
 0x611   : > { %v2975_v50 = vpop.eup %2974  ;;  %2770 = vmatprep.subr.bf16.mxu0 %v2769_v6 }
 0x612   : > { %v1668_v51 = vmul.f32 %v2975_v50, %v2959_v22  ;;  %v2907_v52 = vpop.permute.xlu0 %2906  ;;  %v2777_v22 = vpack.c.bf16 %v2105_v19, %v2104_v17 }
 0x613   : > { %v2909_v53 = vunpack.i.h.bf16 %v2907_v52  ;;  %v2908_v54 = vunpack.i.l.bf16 %v2907_v52 }
 0x614   : > { %2643 = vmatprep.mubr.msk.f32.mxu0 %vm430_vm1, %v1668_v51 }
 0x615   : > { %v2977_v55 = vpop.eup %2976  ;;  %v2757_v20 = vpack.c.bf16 %v2909_v53, %v2908_v54 }
 0x616   : > { %v2979_v56 = vpop.eup %2978  ;;  %v1669_v57 = vmul.f32 %v2977_v55, %v2963_v33 }
 0x617   : > { %2758 = vmatprep.subr.bf16.mxu1 %v2757_v20  ;;  %v1667_v58 = vmul.f32 %v2979_v56, %v2961_v16  ;;  %v2106_v16 = vld [vmem:[%s3658_s4 + $0x30] sm:$0xff] }
 0x618   : > { %2760 = vmatpush3.bf16.msra.mxu1 %v2757_v20  ;;  %2644 = vmatmul.mubr.msk.f32.vlgmr.msra.gmra.mrb[12].mxu0 %vm430_vm1, %v1669_v57  ;;  %v2781_v28 = vpack.c.bf16 %v2107_v23, %v2106_v16 }
 0x619   : > { %v2981_v0 = vpop.eup %2980  ;;  %2772 = vmatpush3.bf16.msra.mxu0 %v2769_v6 }
 0x61a   : > { %v1671_v3 = vmul.f32 %v2981_v0, %v3513_v24  ;;  %2774 = vmatprep.subr.bf16.mxu0 %v2773_v15 }
 0x61b   : > { %2637 = vmatmul.mubr.msk.f32.vlgmr.msra.gmra.mrb[22].mxu1 %vm430_vm1, %v1667_v58 }
 0x61d   : > { %2776 = vmatpush3.bf16.msra.mxu0 %v2773_v15 }
 0x61e   : > { %2778 = vmatprep.subr.bf16.mxu0 %v2777_v22 }
 0x621   : > { %2780 = vmatpush3.bf16.msra.mxu0 %v2777_v22 }
 0x622   : > { %2782 = vmatprep.subr.bf16.mxu0 %v2781_v28 }
 0x625   : > { %2784 = vmatpush3.bf16.msra.mxu0 %v2781_v28 }
 0x63b   : > { %v1652_v59 = vpop.xlane.xlu1 %1651 }
 0x63c   : > { %2982 = vrcp.f32 %v1652_v59 }
 0x63f   : > { %v2917_v60 = vpop.permute.xlu1 %2916 }
 0x640   : > { %v2919_v61 = vunpack.i.h.bf16 %v2917_v60  ;;  %v2918_v62 = vunpack.i.l.bf16 %v2917_v60 }
 0x642   : > { %v2765_v63 = vpack.c.bf16 %v2919_v61, %v2918_v62 }
 0x644   : > { %2766 = vmatprep.subr.bf16.mxu1 %v2765_v63 }
 0x645   : > { %2768 = vmatpush3.bf16.msra.mxu1 %v2765_v63 }
 0x646   : > { %v2983_v1 = vpop.eup %2982 }
 0x647   : > { %v1670_v2 = vmul.f32 %v2983_v1, %v2967_v21 }
 0x649   : > { %2650 = vmatprep.mubr.msk.f32.mxu1 %vm430_vm1, %v1670_v2 }
 0x64a   : > { %2651 = vmatmul.mubr.msk.f32.vlgmr.msra.gmra.mrb[24].mxu1 %vm430_vm1, %v1671_v3 }
 0x6a9   : > { %v2631_v33 = vpop.f32.mrb[10].mxu0 }
 0x6aa   : > { %2030 = vrot.lane.b32.xlu1 %v2631_v33, %s3089_s26  ;;  %v1750_v9 = vpop.f32.mrb[11].mxu0 }
 0x6ab   : > { %2028 = vrot.lane.b32.xlu0 %v1750_v9, %s3089_s26 }
 0x6eb   : > { %v2645_v24 = vpop.f32.mrb[12].mxu0 }
 0x6ec   : > { %v1924_v32 = vpop.f32.mrb[13].mxu0 }
 0x6ee   : > { %v2638_v35 = vpop.f32.mrb[22].mxu1 }
 0x6ef   : > { %2034 = vrot.lane.b32.xlu1 %v2638_v35, %s3089_s26  ;;  %v1837_v36 = vpop.f32.mrb[23].mxu1 }
 0x6f0   : > { %2032 = vrot.lane.b32.xlu0 %v1837_v36, %s3089_s26 }
 0x6f3   : > { %2038 = vrot.lane.b32.xlu1 %v2645_v24, %s3089_s26 }
 0x6f4   : > { %2036 = vrot.lane.b32.xlu0 %v1924_v32, %s3089_s26 }
 0x71c   : > { %v2031_v21 = vpop.permute.xlu1 %2030 }
 0x71d   : > { %v2053_v37 = vsel %vm292_vm0, %v3469_v7, %v2031_v21  ;;  %v2652_v26 = vpop.f32.mrb[24].mxu1  ;;  %v2029_v39 = vpop.permute.xlu0 %2028 }
 0x71e   : > { %v2061_v31 = vadd.f32 3.0, %v2053_v37  ;;  %v2052_v29 = vsel %vm292_vm0, %v3471_v8, %v2029_v39  ;;  %2042 = vrot.lane.b32.xlu1 %v2652_v26, %s3089_s26  ;;  %v2011_v40 = vpop.f32.mrb[25].mxu1 }
 0x71f   : > { %v2060_v41 = vadd.f32 3.0, %v2052_v29  ;;  %2040 = vrot.lane.b32.xlu0 %v2011_v40, %s3089_s26 }
 0x720   : > { %v2069_v25 = vmax.f32 %v2061_v31, 0.0 }
 0x721   : > { %v2068_v18 = vmax.f32 %v2060_v41, 0.0 }
 0x722   : > { %v2077_v43 = vmin.f32 %v2069_v25, 6.0 }
 0x723   : > { %v2076_v42 = vmin.f32 %v2068_v18, 6.0 }
 0x724   : > { %v2085_v34 = vmul.f32 %v2077_v43, %v2053_v37 }
 0x725   : > { %v2084_v44 = vmul.f32 %v2076_v42, %v2052_v29 }
 0x726   : > { %v2093_v45 = vmul.f32 0.16666667, %v2085_v34 }
 0x727   : > { %v2092_v7 = vmul.f32 0.16666667, %v2084_v44 }
 0x729   : > { %2669 = vmatprep.mubr.msk.f32.mxu0 %vm2115_vm3, %v2092_v7 }
 0x72a   : > { %2670 = vmatmul.mubr.msk.f32.vlgmr.msra.gmra.mrb[14].mxu0 %vm2115_vm3, %v2093_v45 }
 0x761   : > { %v2035_v8 = vpop.permute.xlu1 %2034 }
 0x762   : > { %v2055_v46 = vsel %vm292_vm0, %v3473_v10, %v2035_v8  ;;  %v2033_v47 = vpop.permute.xlu0 %2032 }
 0x763   : > { %v2063_v48 = vadd.f32 3.0, %v2055_v46  ;;  %v2054_v49 = vsel %vm292_vm0, %v3475_v11, %v2033_v47 }
 0x764   : > { %v2062_v50 = vadd.f32 3.0, %v2054_v49 }
 0x765   : > { %v2071_v51 = vmax.f32 %v2063_v48, 0.0  ;;  %v2039_v52 = vpop.permute.xlu1 %2038 }
 0x766   : > { %v2070_v53 = vmax.f32 %v2062_v50, 0.0  ;;  %v2057_v54 = vsel %vm292_vm0, %v3477_v12, %v2039_v52  ;;  %v2037_v55 = vpop.permute.xlu0 %2036 }
 0x767   : > { %v2079_v20 = vmin.f32 %v2071_v51, 6.0  ;;  %v2065_v56 = vadd.f32 3.0, %v2057_v54  ;;  %v2056_v57 = vsel %vm292_vm0, %v3479_v13, %v2037_v55 }
 0x768   : > { %v2078_v58 = vmin.f32 %v2070_v53, 6.0  ;;  %v2064_v10 = vadd.f32 3.0, %v2056_v57 }
 0x769   : > { %v2087_v59 = vmul.f32 %v2079_v20, %v2055_v46  ;;  %v2073_v60 = vmax.f32 %v2065_v56, 0.0 }
 0x76a   : > { %v2086_v61 = vmul.f32 %v2078_v58, %v2054_v49  ;;  %v2072_v62 = vmax.f32 %v2064_v10, 0.0 }
 0x76b   : > { %v2081_v11 = vmin.f32 %v2073_v60, 6.0  ;;  %v2095_v1 = vmul.f32 0.16666667, %v2087_v59 }
 0x76c   : > { %v2094_v63 = vmul.f32 0.16666667, %v2086_v61  ;;  %v2080_v0 = vmin.f32 %v2072_v62, 6.0 }
 0x76d   : > { %v2089_v2 = vmul.f32 %v2081_v11, %v2057_v54 }
 0x76e   : > { %v2088_v3 = vmul.f32 %v2080_v0, %v2056_v57  ;;  %2672 = vmatprep.mubr.msk.f32.mxu0 %vm2115_vm3, %v2094_v63 }
 0x76f   : > { %2673 = vmatmul.mubr.msk.f32.gmra.mrb[16].mxu0 %vm2115_vm3, %v2095_v1  ;;  %v2097_v4 = vmul.f32 0.16666667, %v2089_v2 }
 0x770   : > { %v2096_v12 = vmul.f32 0.16666667, %v2088_v3 }
 0x772   : > { %2675 = vmatprep.mubr.msk.f32.mxu0 %vm2115_vm3, %v2096_v12 }
 0x773   : > { %2676 = vmatmul.mubr.msk.f32.gmra.mrb[18].mxu0 %vm2115_vm3, %v2097_v4 }
 0x790   : > { %v2043_v13 = vpop.permute.xlu1 %2042 }
 0x791   : > { %v2059_v5 = vsel %vm292_vm0, %v3490_v27, %v2043_v13  ;;  %v2041_v6 = vpop.permute.xlu0 %2040  ;;  %v2410_v27 = vld [vmem:[%s3659_s5] ss:$0 sm:$0xff] }
 0x792   : > { %v2067_v38 = vadd.f32 3.0, %v2059_v5  ;;  %v2058_v14 = vsel %vm292_vm0, %v3492_v30, %v2041_v6 }
 0x793   : > { %v2066_v15 = vadd.f32 3.0, %v2058_v14 }
 0x794   : > { %v2075_v17 = vmax.f32 %v2067_v38, 0.0 }
 0x795   : > { %v2074_v19 = vmax.f32 %v2066_v15, 0.0 }
 0x796   : > { %v2083_v22 = vmin.f32 %v2075_v17, 6.0 }
 0x797   : > { %v2082_v16 = vmin.f32 %v2074_v19, 6.0 }
 0x798   : > { %v2091_v23 = vmul.f32 %v2083_v22, %v2059_v5 }
 0x799   : > { %v2090_v28 = vmul.f32 %v2082_v16, %v2058_v14 }
 0x79a   : > { %v2099_v9 = vmul.f32 0.16666667, %v2091_v23 }
 0x79b   : > { %v2098_v33 = vmul.f32 0.16666667, %v2090_v28 }
 0x79d   : > { %2678 = vmatprep.mubr.msk.f32.mxu0 %vm2115_vm3, %v2098_v33 }
 0x79e   : > { %2679 = vmatmul.mubr.msk.f32.gmra.mrb[20].mxu0 %vm2115_vm3, %v2099_v9 }
 0x7fd   : > { %v2671_v24 = vpop.f32.mrb[14].mxu0 }
 0x7fe   : > { %v2212_v30 = vadd.f32 %v2671_v24, %v2410_v27  ;;  %v2206_v32 = vpop.f32.mrb[15].mxu0 }
 0x7ff   : > { %v2207_v35 = vadd.f32 %v2410_v27, %v2206_v32 }
 0x800   : > { %2246 = vst.msk [vmem:[%s270_s19 + $0x8] sm:$0xff] %vm292_vm0, %v2212_v30 }
 0x801   : > { %2245 = vst.msk [vmem:[%s270_s19] sm:$0xff] %vm292_vm0, %v2207_v35 }
 0x842   : > { %v2674_v36 = vpop.f32.mrb[16].mxu0 }
 0x843   : > { %v2222_v21 = vadd.f32 %v2674_v36, %v2410_v27  ;;  %v2216_v37 = vpop.f32.mrb[17].mxu0 }
 0x844   : > { %v2217_v26 = vadd.f32 %v2410_v27, %v2216_v37 }
 0x845   : > { %2248 = vst.msk [vmem:[%s270_s19 + $0x18] sm:$0xff] %vm292_vm0, %v2222_v21 }
 0x846   : > { %2247 = vst.msk [vmem:[%s270_s19 + $0x10] sm:$0xff] %vm292_vm0, %v2217_v26  ;;  %v2677_v39 = vpop.f32.mrb[18].mxu0 }
 0x847   : > { %v2232_v31 = vadd.f32 %v2677_v39, %v2410_v27  ;;  %v2226_v29 = vpop.f32.mrb[19].mxu0 }
 0x848   : > { %v2227_v40 = vadd.f32 %v2410_v27, %v2226_v29 }
 0x849   : > { %2250 = vst.msk [vmem:[%s270_s19 + $0x28] sm:$0xff] %vm292_vm0, %v2232_v31 }
 0x84a   : > { %2249 = vst.msk [vmem:[%s270_s19 + $0x20] sm:$0xff] %vm292_vm0, %v2227_v40 }
 0x871   : > { %v2680_v41 = vpop.f32.mrb[20].mxu0 }
 0x872   : > { %v2242_v25 = vadd.f32 %v2680_v41, %v2410_v27  ;;  %v2236_v18 = vpop.f32.mrb[21].mxu0 }
 0x873   : > { %v2237_v43 = vadd.f32 %v2410_v27, %v2236_v18 }
 0x874   : > { %2252 = vst.msk [vmem:[%s270_s19 + $0x38] sm:$0xff] %vm292_vm0, %v2242_v25 }
 0x875   : > { %2251 = vst.msk [vmem:[%s270_s19 + $0x30] sm:$0xff] %vm292_vm0, %v2237_v43 }
 0x876   : > { %3027 = shalt.err (!%p3024_p2)
}
 0x877   : > { %s3028_s13 = scalar_lea.hbm %s3606_s15, 1024  ;;  %s3032_s18 = scalar_lea.hbm %s3660_s6, 2048 }
 0x878   : > { %p3029_p4 = scmp.ne.s32.totalorder %s3606_s15, %s3028_s13  ;;  %p3033_p9 = scmp.lt.u32.totalorder %s3606_s15, %s3660_s6 }
 0x879   : > { %p3034_p1 = scmp.lt.u32.totalorder %s3032_s18, %s3028_s13  ;;  %p3036_p6 = scmp.lt.u32.totalorder %s3028_s13, %s3606_s15 }
 0x87a   : > { %p3030_p5 = pnand %p3029_p4, %p3669_p11 }
 0x87b   : > { %p3035_p3 = por %p3034_p1, %p3033_p9 }
 0x87c   : > { %p3031_p7 = pneg %p3030_p5 }
 0x87d   : > { %p3037_p12 = por %p3036_p6, %p3035_p3 }
 0x87f   : > { %p3038_p13 = pnand %p3037_p12, %p3031_p7 }
 0x881   : > { %3041 = shalt.err (!%p3038_p13)
}
 0x882   : > { %s3091_s11 = smov 128   ;;  %s3092_s14 = smov 8  }
 0x883   : > { %2787 = dma.vmem_to_hbm [thread:$0]  (%p3669_p11), %s3608_s20, 1024, %s3606_s15, %s2254_s25, %s3091_s11, %s3091_s11, %s3092_s14  }
 0x884 PF: > { %s2283_s17 = sand.u32 1, %s3068_s21   ;;  %p3670_p8 = scmp.ne.s32.totalorder %s3665_s10, 0 }
 0x885   : > { %p3671_p10 = scmp.ge.s32.totalorder %s3080_s24, 2  ;;  %s2284_s8 = scalar_lea.sflag [#allocation4], %s2283_s17 }
 0x887   : > { %p2794_p0 = pnand %p3671_p10, %p3670_p8 }
 0x889   : > { %3063 = dma.done.wait (!%p2794_p0), %s2284_s8, 1024  }
 0x88a   : > { %3065 = vsyncadd (!%p2794_p0), %s2284_s8, 4294966272  ;;  %p19_p2 = scmp.ge.s32.totalorder %s3153_s27, 4   ;;  %s3672_s21 = smov %s3072_s22 }
 0x88b   : > { %s3673_s22 = smov %s3076_s23  ;;  %s3674_s23 = smov %s3165_s30 }
 0x88c   : > { %s3675_s24 = smov %s3153_s27  ;;  %21 = sbr.rel (!%p19_p2) target bundleno = 5 (0x5), region = 90 }
 0x893   :  { %2289 = vsyncpa [#allocation3], 1 }
 0x894   :  { %2291 = vsyncpa [#allocation3 + $0x1], 1 }
 0x895   :  { %2292 = vsyncpa [#allocation4], 1 }
 0x896   :  { %2294 = vsyncpa [#allocation4 + $0x1], 1 }

</bundles_post_ra>
